<compile_context>
chip_gen: v7x
topology: tpu7x:2x2x1
jax: 0.10.0
libtpu: 0.0.40
codegen_flags: <defaults>
</compile_context>

<pallas_src>
import functools

import jax
import jax.numpy as jnp
from jax.experimental import pallas as pl
from jax.experimental.pallas import tpu as pltpu


def _round_up(x, m):
    return (x + m - 1) // m * m


def _maybe_cast(a, dtype):
    return a if a.dtype == dtype else a.astype(dtype)


# ---------------------------------------------------------------------------
# Pass 1: pw1 (split GLU halves) -> GLU -> depthwise conv + BN partial stats
# ---------------------------------------------------------------------------
def _conv_glu_dw_kernel(x_ref, halo_ref, w1a_ref, b1a_ref, w1g_ref, b1g_ref,
                        dw_ref, bd_ref, v_ref, stats_ref, u_ref,
                        *, kernel_size, pad, lpad, matmul_dtype):
    B, tile_t, D = x_ref.shape

    w1a = _maybe_cast(w1a_ref[...], matmul_dtype)
    w1g = _maybe_cast(w1g_ref[...], matmul_dtype)
    b1a = b1a_ref[...]
    b1g = b1g_ref[...]

    def pw1_glu(x2d):
        xc = _maybe_cast(x2d, matmul_dtype)
        a = jnp.dot(xc, w1a, preferred_element_type=jnp.float32) + b1a
        g = jnp.dot(xc, w1g, preferred_element_type=jnp.float32) + b1g
        return a * jax.nn.sigmoid(g)

    # Main tile: one big (B*tile_t, D) x (D, D) matmul per GLU half; store the
    # result sublane-aligned (offset lpad is a multiple of 8).
    u_main = pw1_glu(x_ref[...].reshape(B * tile_t, D))
    u_ref[:, lpad:lpad + tile_t, :] = u_main.reshape(B, tile_t, D)

    # Halo frames: `pad` frames on each side of the tile (zeros at the sequence
    # edges -> glu(bias1), matching zero-padding before pointwise_conv1).
    u_halo = pw1_glu(halo_ref[...].reshape(B * 2 * pad, D))
    u_halo = u_halo.reshape(B, 2 * pad, D)
    u_ref[:, lpad - pad:lpad, :] = u_halo[:, :pad, :]
    u_ref[:, lpad + tile_t:lpad + tile_t + pad, :] = u_halo[:, pad:, :]

    # Depthwise conv (valid over the haloed window); K is small and static.
    dw = dw_ref[...]                                     # (K, D)
    acc = jnp.zeros((B, tile_t, D), jnp.float32)
    base = lpad - pad
    for k in range(kernel_size):
        acc = acc + u_ref[:, base + k:base + k + tile_t, :] * dw[k:k + 1, :][None]
    v = acc + bd_ref[...][None]
    v_ref[...] = v

    # Per-tile partial BatchNorm statistics (sum, sum of squares per channel).
    v2 = v.reshape(B * tile_t, D)
    s = jnp.sum(v2, axis=0, keepdims=True)
    ss = jnp.sum(v2 * v2, axis=0, keepdims=True)
    stats_ref[...] = jnp.concatenate([s, ss], axis=0)[None]


# ---------------------------------------------------------------------------
# Pass 2: folded BatchNorm (scale/shift) -> ReLU -> pointwise_conv2
# ---------------------------------------------------------------------------
def _bn_relu_pw2_kernel(v_ref, scale_ref, shift_ref, w2_ref, b2_ref, o_ref,
                        *, matmul_dtype):
    B, tile_t, D = v_ref.shape
    r = jnp.maximum(v_ref[...] * scale_ref[...][None] + shift_ref[...][None], 0.0)
    y = jnp.dot(_maybe_cast(r.reshape(B * tile_t, D), matmul_dtype),
                _maybe_cast(w2_ref[...], matmul_dtype),
                preferred_element_type=jnp.float32) + b2_ref[...]
    o_ref[...] = y.reshape(B, tile_t, D).astype(o_ref.dtype)


# ---------------------------------------------------------------------------
# Wrapper
# ---------------------------------------------------------------------------
def causal_convolution_module(x, params, kernel_size, *, eps=1e-5,
                              tile_t=None, matmul_dtype=jnp.float32):
    """x: (B, T, D) float32 -> (B, T, D) float32."""
    B, T, D = x.shape
    assert kernel_size >= 3 and (kernel_size - 1) % 2 == 0
    pad = (kernel_size - 1) // 2
    w1a, b1a, w1g, b1g, dw, bd, gamma, beta, w2, b2 = params

    if tile_t is None:
        tile_t = min(T, 128)
    assert T % tile_t == 0 and tile_t % 8 == 0 and pad <= tile_t
    nt = T // tile_t
    lpad = max(8, _round_up(pad, 8))      # aligned left margin in the u scratch

    # Small halo side-array: `pad` frames on each side of every tile, zeros at
    # the sequence boundaries (== zero padding before pw1).  Only touches a
    # 2*pad/tile_t fraction of x — no full-array pad / HBM round trip.
    xr = x.reshape(B, nt, tile_t, D)
    zeros_edge = jnp.zeros((B, 1, pad, D), x.dtype)
    left = jnp.concatenate([zeros_edge, xr[:, :-1, tile_t - pad:, :]], axis=1)
    right = jnp.concatenate([xr[:, 1:, :pad, :], zeros_edge], axis=1)
    halos = jnp.concatenate([left, right], axis=2)          # (B, nt, 2p, D)
    halos = jnp.transpose(halos, (1, 0, 2, 3))              # (nt, B, 2p, D)

    def const_spec(shape):
        n = len(shape)
        return pl.BlockSpec(shape, lambda t: (0,) * n)

    # ---- pass 1 ----
    flops1 = 2 * B * (T + 2 * pad * nt) * D * 2 * D + 2 * B * T * D * kernel_size
    trans1 = B * (T + 2 * pad * nt) * D
    bytes1 = 4 * (x.size + halos.size + 2 * D * D + (kernel_size + 3) * D
                  + B * T * D + nt * 2 * D)

    kernel1 = functools.partial(
        _conv_glu_dw_kernel, kernel_size=kernel_size, pad=pad, lpad=lpad,
        matmul_dtype=matmul_dtype)

    v, partial_stats = pl.pallas_call(
        kernel1,
        out_shape=(jax.ShapeDtypeStruct((B, T, D), jnp.float32),
                   jax.ShapeDtypeStruct((nt, 2, D), jnp.float32)),
        grid=(nt,),
        in_specs=[
            pl.BlockSpec((B, tile_t, D), lambda t: (0, t, 0)),       # x tile
            pl.BlockSpec((1, B, 2 * pad, D), lambda t: (t, 0, 0, 0)),  # halos
            const_spec((D, D)), const_spec((1, D)),                  # w1a, b1a
            const_spec((D, D)), const_spec((1, D)),                  # w1g, b1g
            const_spec((kernel_size, D)), const_spec((1, D)),        # dw, bd
        ],
        out_specs=[
            pl.BlockSpec((B, tile_t, D), lambda t: (0, t, 0)),       # v
            pl.BlockSpec((1, 2, D), lambda t: (t, 0, 0)),            # stats
        ],
        scratch_shapes=[pltpu.VMEM((B, lpad + tile_t + lpad, D), jnp.float32)],
        compiler_params=pltpu.CompilerParams(dimension_semantics=("parallel",)),
        cost_estimate=pl.CostEstimate(flops=flops1, transcendentals=trans1,
                                      bytes_accessed=bytes1),
    )(x, halos, w1a, b1a, w1g, b1g, dw, bd)

    # ---- tiny glue: global BN stats -> per-channel scale/shift ----
    stats = jnp.sum(partial_stats, axis=0)                   # (2, D)
    cnt = B * T
    mean = stats[0] / cnt
    var = jnp.maximum(stats[1] / cnt - mean * mean, 0.0)     # biased (train-mode)
    scale = (gamma[0] * jax.lax.rsqrt(var + eps))[None, :]   # (1, D)
    shift = (beta[0] - mean * scale[0])[None, :]             # (1, D)

    # ---- pass 2 ----
    flops2 = 2 * B * T * D * D + 4 * B * T * D
    bytes2 = 4 * (2 * B * T * D + D * D + 4 * D)
    kernel2 = functools.partial(_bn_relu_pw2_kernel, matmul_dtype=matmul_dtype)

    out = pl.pallas_call(
        kernel2,
        out_shape=jax.ShapeDtypeStruct((B, T, D), x.dtype),
        grid=(nt,),
        in_specs=[
            pl.BlockSpec((B, tile_t, D), lambda t: (0, t, 0)),       # v tile
            const_spec((1, D)), const_spec((1, D)),                  # scale/shift
            const_spec((D, D)), const_spec((1, D)),                  # w2, b2
        ],
        out_specs=pl.BlockSpec((B, tile_t, D), lambda t: (0, t, 0)),
        compiler_params=pltpu.CompilerParams(dimension_semantics=("parallel",)),
        cost_estimate=pl.CostEstimate(flops=flops2, transcendentals=0,
                                      bytes_accessed=bytes2),
    )(v, scale, shift, w2, b2)
    return out


# ---------------------------------------------------------------------------
# Parameters / reference
# ---------------------------------------------------------------------------
def init_params(key, channels, kernel_size):
    """Deterministic synthetic parameters matching the PyTorch module shapes.

    pointwise_conv1's torch weight (2D, D, 1) is stored pre-split into the two
    GLU halves w1a / w1g (each (D, D)) to keep every matmul lane-dense.
    """
    D, K = channels, kernel_size
    ks = jax.random.split(key, 10)
    w1a = 0.1 * jax.random.normal(ks[0], (D, D), jnp.float32)
    b1a = 0.1 * jax.random.normal(ks[1], (1, D), jnp.float32)
    w1g = 0.1 * jax.random.normal(ks[2], (D, D), jnp.float32)
    b1g = 0.1 * jax.random.normal(ks[3], (1, D), jnp.float32)
    dw = 0.1 * jax.random.normal(ks[4], (K, D), jnp.float32)   # torch (D,1,K)
    bd = 0.1 * jax.random.normal(ks[5], (1, D), jnp.float32)
    gamma = 1.0 + 0.05 * jax.random.normal(ks[6], (1, D), jnp.float32)
    beta = 0.05 * jax.random.normal(ks[7], (1, D), jnp.float32)
    w2 = 0.1 * jax.random.normal(ks[8], (D, D), jnp.float32)   # torch (D,D,1)
    b2 = 0.1 * jax.random.normal(ks[9], (1, D), jnp.float32)
    return (w1a, b1a, w1g, b1g, dw, bd, gamma, beta, w2, b2)


def reference_jax(x, params, kernel_size, eps=1e-5):
    """Pure-JAX replica of the PyTorch forward (sanity check)."""
    w1a, b1a, w1g, b1g, dw, bd, gamma, beta, w2, b2 = params
    B, T, D = x.shape
    p = (kernel_size - 1) // 2
    hp = jax.lax.Precision.HIGHEST
    xp = jnp.pad(x, ((0, 0), (p, p), (0, 0)))
    a = jnp.einsum('btd,de->bte', xp, w1a, precision=hp) + b1a[None]
    g = jnp.einsum('btd,de->bte', xp, w1g, precision=hp) + b1g[None]
    u = a * jax.nn.sigmoid(g)
    acc = jnp.zeros((B, T, D), jnp.float32)
    for k in range(kernel_size):
        acc = acc + u[:, k:k + T, :] * dw[k][None, None, :]
    v = acc + bd[None]
    mean = jnp.mean(v, axis=(0, 1), keepdims=True)
    var = jnp.mean((v - mean) ** 2, axis=(0, 1), keepdims=True)
    r = jnp.maximum((v - mean) / jnp.sqrt(var + eps) * gamma[None] + beta[None], 0.0)
    return jnp.einsum('btd,de->bte', r, w2, precision=hp) + b2[None]


if __name__ == "__main__":
    # Small but lane-dense shapes: D is a multiple of 128, two time tiles so the
    # halo exchange and two-pass BatchNorm are actually exercised.
    B, T, D = 2, 32, 128
    kernel_size = 3
    tile_t = 16

    key = jax.random.PRNGKey(0)
    kx, kp = jax.random.split(key)
    x = jax.random.normal(kx, (B, T, D), jnp.float32)
    params = init_params(kp, D, kernel_size)

    fn = jax.jit(functools.partial(causal_convolution_module,
                                   kernel_size=kernel_size, tile_t=tile_t))
    out = jax.block_until_ready(fn(x, params))

    ref = reference_jax(x, params, kernel_size)
    assert out.shape == (B, T, D)
    assert jnp.allclose(out, ref, atol=5e-4, rtol=5e-4), (
        "mismatch vs reference: max abs diff %e"
        % float(jnp.max(jnp.abs(out - ref))))

    # TODO(synk): set matmul_dtype=jnp.bfloat16 for v6e/v7x production runs
    # (f32 accumulation kept); left in f32 here for the exact reference check.
    print("KERNEL_OK")
</pallas_src>

<mosaic_0001>
module attributes {stable_mosaic.version = 11 : i64} {
  func.func @_conv_glu_dw_kernel(%arg0: i32, %arg1: memref<2x16x128xf32, #tpu.memory_space<vmem>>, %arg2: memref<1x2x2x128xf32, #tpu.memory_space<vmem>>, %arg3: memref<128x128xf32, #tpu.memory_space<vmem>>, %arg4: memref<1x128xf32, #tpu.memory_space<vmem>>, %arg5: memref<128x128xf32, #tpu.memory_space<vmem>>, %arg6: memref<1x128xf32, #tpu.memory_space<vmem>>, %arg7: memref<3x128xf32, #tpu.memory_space<vmem>>, %arg8: memref<1x128xf32, #tpu.memory_space<vmem>>, %arg9: memref<2x16x128xf32, #tpu.memory_space<vmem>>, %arg10: memref<1x2x128xf32, #tpu.memory_space<vmem>>, %arg11: memref<2x32x128xf32, #tpu.memory_space<vmem>>) attributes {dimension_semantics = [#tpu.dimension_semantics<parallel>], iteration_bounds = array<i64: 2>, scalar_prefetch = 0 : i64, scratch_operands = 1 : i64, tpu.core_type = #tpu.core_type<tc>, window_params = [{transform_indices = @transform_0, window_bounds = array<i64: 2, 16, 128>}, {transform_indices = @transform_1, window_bounds = array<i64: 1, 2, 2, 128>}, {pipeline_mode = #tpu.pipeline_mode<synchronous>, transform_indices = @transform_2, window_bounds = array<i64: 128, 128>}, {pipeline_mode = #tpu.pipeline_mode<synchronous>, transform_indices = @transform_3, window_bounds = array<i64: 1, 128>}, {pipeline_mode = #tpu.pipeline_mode<synchronous>, transform_indices = @transform_4, window_bounds = array<i64: 128, 128>}, {pipeline_mode = #tpu.pipeline_mode<synchronous>, transform_indices = @transform_5, window_bounds = array<i64: 1, 128>}, {pipeline_mode = #tpu.pipeline_mode<synchronous>, transform_indices = @transform_6, window_bounds = array<i64: 3, 128>}, {pipeline_mode = #tpu.pipeline_mode<synchronous>, transform_indices = @transform_7, window_bounds = array<i64: 1, 128>}, {transform_indices = @transform_8, window_bounds = array<i64: 2, 16, 128>}, {transform_indices = @transform_9, window_bounds = array<i64: 1, 2, 128>}]} {
    %c0 = arith.constant 0 : index
    %c0_0 = arith.constant 0 : index
    %0 = vector.load %arg3[%c0, %c0_0] : memref<128x128xf32, #tpu.memory_space<vmem>>, vector<128x128xf32>
    %c0_1 = arith.constant 0 : index
    %c0_2 = arith.constant 0 : index
    %1 = vector.load %arg5[%c0_1, %c0_2] : memref<128x128xf32, #tpu.memory_space<vmem>>, vector<128x128xf32>
    %c0_3 = arith.constant 0 : index
    %c0_4 = arith.constant 0 : index
    %2 = vector.load %arg4[%c0_3, %c0_4] : memref<1x128xf32, #tpu.memory_space<vmem>>, vector<1x128xf32>
    %c0_5 = arith.constant 0 : index
    %c0_6 = arith.constant 0 : index
    %3 = vector.load %arg6[%c0_5, %c0_6] : memref<1x128xf32, #tpu.memory_space<vmem>>, vector<1x128xf32>
    %c0_7 = arith.constant 0 : index
    %c0_8 = arith.constant 0 : index
    %c0_9 = arith.constant 0 : index
    %4 = vector.load %arg1[%c0_7, %c0_8, %c0_9] : memref<2x16x128xf32, #tpu.memory_space<vmem>>, vector<2x16x128xf32>
    %5 = vector.shape_cast %4 : vector<2x16x128xf32> to vector<32x128xf32>
    %cst = arith.constant dense<0.000000e+00> : vector<32x128xf32>
    %6 = tpu.matmul %5, %0, %cst {dimension_numbers = #tpu.dot_dimension_numbers<[1], [0], [0], [1], [0, 0, 1, 1], [], []>} : vector<32x128xf32>, vector<128x128xf32>, vector<32x128xf32> -> vector<32x128xf32>
    %7 = vector.broadcast %2 : vector<1x128xf32> to vector<32x128xf32>
    %8 = arith.addf %6, %7 : vector<32x128xf32>
    %cst_10 = arith.constant dense<0.000000e+00> : vector<32x128xf32>
    %9 = tpu.matmul %5, %1, %cst_10 {dimension_numbers = #tpu.dot_dimension_numbers<[1], [0], [0], [1], [0, 0, 1, 1], [], []>} : vector<32x128xf32>, vector<128x128xf32>, vector<32x128xf32> -> vector<32x128xf32>
    %10 = vector.broadcast %3 : vector<1x128xf32> to vector<32x128xf32>
    %11 = arith.addf %9, %10 : vector<32x128xf32>
    %12 = arith.negf %11 : vector<32x128xf32>
    %13 = math.exp %12 : vector<32x128xf32>
    %cst_11 = arith.constant 1.000000e+00 : f32
    %14 = vector.broadcast %cst_11 : f32 to vector<32x128xf32>
    %15 = arith.addf %14, %13 : vector<32x128xf32>
    %16 = arith.divf %14, %15 : vector<32x128xf32>
    %17 = arith.mulf %8, %16 : vector<32x128xf32>
    %18 = vector.shape_cast %17 : vector<32x128xf32> to vector<2x16x128xf32>
    %c0_12 = arith.constant 0 : index
    %c8 = arith.constant 8 : index
    %c0_13 = arith.constant 0 : index
    %19 = vector.load %arg11[%c0_12, %c8, %c0_13] : memref<2x32x128xf32, #tpu.memory_space<vmem>>, vector<2x16x128xf32>
    tpu.vector_store %arg11[%c0_12, %c8, %c0_13], %18 {strides = array<i32>} : memref<2x32x128xf32, #tpu.memory_space<vmem>>, vector<2x16x128xf32>,
    %c0_14 = arith.constant 0 : index
    %c0_15 = arith.constant 0 : index
    %c0_16 = arith.constant 0 : index
    %c0_17 = arith.constant 0 : index
    %20 = vector.load %arg2[%c0_14, %c0_15, %c0_16, %c0_17] : memref<1x2x2x128xf32, #tpu.memory_space<vmem>>, vector<1x2x2x128xf32>
    %21 = vector.shape_cast %20 : vector<1x2x2x128xf32> to vector<4x128xf32>
    %cst_18 = arith.constant dense<0.000000e+00> : vector<4x128xf32>
    %22 = tpu.matmul %21, %0, %cst_18 {dimension_numbers = #tpu.dot_dimension_numbers<[1], [0], [0], [1], [0, 0, 1, 1], [], []>} : vector<4x128xf32>, vector<128x128xf32>, vector<4x128xf32> -> vector<4x128xf32>
    %23 = vector.broadcast %2 : vector<1x128xf32> to vector<4x128xf32>
    %24 = arith.addf %22, %23 : vector<4x128xf32>
    %cst_19 = arith.constant dense<0.000000e+00> : vector<4x128xf32>
    %25 = tpu.matmul %21, %1, %cst_19 {dimension_numbers = #tpu.dot_dimension_numbers<[1], [0], [0], [1], [0, 0, 1, 1], [], []>} : vector<4x128xf32>, vector<128x128xf32>, vector<4x128xf32> -> vector<4x128xf32>
    %26 = vector.broadcast %3 : vector<1x128xf32> to vector<4x128xf32>
    %27 = arith.addf %25, %26 : vector<4x128xf32>
    %28 = arith.negf %27 : vector<4x128xf32>
    %29 = math.exp %28 : vector<4x128xf32>
    %cst_20 = arith.constant 1.000000e+00 : f32
    %30 = vector.broadcast %cst_20 : f32 to vector<4x128xf32>
    %31 = arith.addf %30, %29 : vector<4x128xf32>
    %32 = arith.divf %30, %31 : vector<4x128xf32>
    %33 = arith.mulf %24, %32 : vector<4x128xf32>
    %34 = vector.shape_cast %33 : vector<4x128xf32> to vector<2x2x128xf32>
    %35 = vector.extract_strided_slice %34 {offsets = [0, 0, 0], sizes = [2, 1, 128], strides = [1, 1, 1]} : vector<2x2x128xf32> to vector<2x1x128xf32>
    %c0_21 = arith.constant 0 : index
    %c7 = arith.constant 7 : index
    %c0_22 = arith.constant 0 : index
    %36 = vector.load %arg11[%c0_21, %c7, %c0_22] : memref<2x32x128xf32, #tpu.memory_space<vmem>>, vector<2x1x128xf32>
    tpu.vector_store %arg11[%c0_21, %c7, %c0_22], %35 {strides = array<i32>} : memref<2x32x128xf32, #tpu.memory_space<vmem>>, vector<2x1x128xf32>,
    %37 = vector.extract_strided_slice %34 {offsets = [0, 1, 0], sizes = [2, 1, 128], strides = [1, 1, 1]} : vector<2x2x128xf32> to vector<2x1x128xf32>
    %c0_23 = arith.constant 0 : index
    %c24 = arith.constant 24 : index
    %c0_24 = arith.constant 0 : index
    %38 = vector.load %arg11[%c0_23, %c24, %c0_24] : memref<2x32x128xf32, #tpu.memory_space<vmem>>, vector<2x1x128xf32>
    tpu.vector_store %arg11[%c0_23, %c24, %c0_24], %37 {strides = array<i32>} : memref<2x32x128xf32, #tpu.memory_space<vmem>>, vector<2x1x128xf32>,
    %c0_25 = arith.constant 0 : index
    %c0_26 = arith.constant 0 : index
    %39 = vector.load %arg7[%c0_25, %c0_26] : memref<3x128xf32, #tpu.memory_space<vmem>>, vector<3x128xf32>
    %cst_27 = arith.constant 0.000000e+00 : f32
    %40 = vector.broadcast %cst_27 : f32 to vector<2x16x128xf32>
    %c0_28 = arith.constant 0 : index
    %c7_29 = arith.constant 7 : index
    %c0_30 = arith.constant 0 : index
    %41 = vector.load %arg11[%c0_28, %c7_29, %c0_30] : memref<2x32x128xf32, #tpu.memory_space<vmem>>, vector<2x16x128xf32>
    %42 = vector.extract_strided_slice %39 {offsets = [0, 0], sizes = [1, 128], strides = [1, 1]} : vector<3x128xf32> to vector<1x128xf32>
    %43 = vector.shape_cast %42 : vector<1x128xf32> to vector<1x1x128xf32>
    %44 = vector.broadcast %43 : vector<1x1x128xf32> to vector<2x16x128xf32>
    %45 = arith.mulf %41, %44 : vector<2x16x128xf32>
    %46 = arith.addf %40, %45 : vector<2x16x128xf32>
    %c0_31 = arith.constant 0 : index
    %c8_32 = arith.constant 8 : index
    %c0_33 = arith.constant 0 : index
    %47 = vector.load %arg11[%c0_31, %c8_32, %c0_33] : memref<2x32x128xf32, #tpu.memory_space<vmem>>, vector<2x16x128xf32>
    %48 = vector.extract_strided_slice %39 {offsets = [1, 0], sizes = [1, 128], strides = [1, 1]} : vector<3x128xf32> to vector<1x128xf32>
    %49 = vector.shape_cast %48 : vector<1x128xf32> to vector<1x1x128xf32>
    %50 = vector.broadcast %49 : vector<1x1x128xf32> to vector<2x16x128xf32>
    %51 = arith.mulf %47, %50 : vector<2x16x128xf32>
    %52 = arith.addf %46, %51 : vector<2x16x128xf32>
    %c0_34 = arith.constant 0 : index
    %c9 = arith.constant 9 : index
    %c0_35 = arith.constant 0 : index
    %53 = vector.load %arg11[%c0_34, %c9, %c0_35] : memref<2x32x128xf32, #tpu.memory_space<vmem>>, vector<2x16x128xf32>
    %54 = vector.extract_strided_slice %39 {offsets = [2, 0], sizes = [1, 128], strides = [1, 1]} : vector<3x128xf32> to vector<1x128xf32>
    %55 = vector.shape_cast %54 : vector<1x128xf32> to vector<1x1x128xf32>
    %56 = vector.broadcast %55 : vector<1x1x128xf32> to vector<2x16x128xf32>
    %57 = arith.mulf %53, %56 : vector<2x16x128xf32>
    %58 = arith.addf %52, %57 : vector<2x16x128xf32>
    %c0_36 = arith.constant 0 : index
    %c0_37 = arith.constant 0 : index
    %59 = vector.load %arg8[%c0_36, %c0_37] : memref<1x128xf32, #tpu.memory_space<vmem>>, vector<1x128xf32>
    %60 = vector.shape_cast %59 : vector<1x128xf32> to vector<1x1x128xf32>
    %61 = vector.broadcast %60 : vector<1x1x128xf32> to vector<2x16x128xf32>
    %62 = arith.addf %58, %61 : vector<2x16x128xf32>
    %c0_38 = arith.constant 0 : index
    %c0_39 = arith.constant 0 : index
    %c0_40 = arith.constant 0 : index
    %63 = vector.load %arg9[%c0_38, %c0_39, %c0_40] : memref<2x16x128xf32, #tpu.memory_space<vmem>>, vector<2x16x128xf32>
    tpu.vector_store %arg9[%c0_38, %c0_39, %c0_40], %62 {strides = array<i32>} : memref<2x16x128xf32, #tpu.memory_space<vmem>>, vector<2x16x128xf32>,
    %64 = vector.shape_cast %62 : vector<2x16x128xf32> to vector<32x128xf32>
    %cst_41 = arith.constant dense<0.000000e+00> : vector<128xf32>
    %65 = vector.multi_reduction <add>, %64, %cst_41 [0] : vector<32x128xf32> to vector<128xf32>
    %66 = vector.shape_cast %65 : vector<128xf32> to vector<1x128xf32>
    %67 = arith.mulf %64, %64 : vector<32x128xf32>
    %cst_42 = arith.constant dense<0.000000e+00> : vector<128xf32>
    %68 = vector.multi_reduction <add>, %67, %cst_42 [0] : vector<32x128xf32> to vector<128xf32>
    %69 = vector.shape_cast %68 : vector<128xf32> to vector<1x128xf32>
    %70 = tpu.concatenate %66, %69 in 0 : vector<1x128xf32>, vector<1x128xf32> -> vector<2x128xf32>
    %71 = vector.shape_cast %70 : vector<2x128xf32> to vector<1x2x128xf32>
    %c0_43 = arith.constant 0 : index
    %c0_44 = arith.constant 0 : index
    %c0_45 = arith.constant 0 : index
    %72 = vector.load %arg10[%c0_43, %c0_44, %c0_45] : memref<1x2x128xf32, #tpu.memory_space<vmem>>, vector<1x2x128xf32>
    tpu.vector_store %arg10[%c0_43, %c0_44, %c0_45], %71 {strides = array<i32>} : memref<1x2x128xf32, #tpu.memory_space<vmem>>, vector<1x2x128xf32>,
    return
  }
  func.func @transform_0(%arg0: i32) -> (i32, i32, i32) {
    %c0_i32 = arith.constant 0 : i32
    %c0_i32_0 = arith.constant 0 : i32
    %c0_i32_1 = arith.constant 0 : i32
    return %c0_i32, %arg0, %c0_i32_0 : i32, i32, i32
  }
  func.func @transform_1(%arg0: i32) -> (i32, i32, i32, i32) {
    %c0_i32 = arith.constant 0 : i32
    %c0_i32_0 = arith.constant 0 : i32
    %c0_i32_1 = arith.constant 0 : i32
    %c0_i32_2 = arith.constant 0 : i32
    return %arg0, %c0_i32, %c0_i32_0, %c0_i32_1 : i32, i32, i32, i32
  }
  func.func @transform_2(%arg0: i32) -> (i32, i32) {
    %c0_i32 = arith.constant 0 : i32
    %c0_i32_0 = arith.constant 0 : i32
    %c0_i32_1 = arith.constant 0 : i32
    return %c0_i32, %c0_i32_0 : i32, i32
  }
  func.func @transform_3(%arg0: i32) -> (i32, i32) {
    %c0_i32 = arith.constant 0 : i32
    %c0_i32_0 = arith.constant 0 : i32
    %c0_i32_1 = arith.constant 0 : i32
    return %c0_i32, %c0_i32_0 : i32, i32
  }
  func.func @transform_4(%arg0: i32) -> (i32, i32) {
    %c0_i32 = arith.constant 0 : i32
    %c0_i32_0 = arith.constant 0 : i32
    %c0_i32_1 = arith.constant 0 : i32
    return %c0_i32, %c0_i32_0 : i32, i32
  }
  func.func @transform_5(%arg0: i32) -> (i32, i32) {
    %c0_i32 = arith.constant 0 : i32
    %c0_i32_0 = arith.constant 0 : i32
    %c0_i32_1 = arith.constant 0 : i32
    return %c0_i32, %c0_i32_0 : i32, i32
  }
  func.func @transform_6(%arg0: i32) -> (i32, i32) {
    %c0_i32 = arith.constant 0 : i32
    %c0_i32_0 = arith.constant 0 : i32
    %c0_i32_1 = arith.constant 0 : i32
    return %c0_i32, %c0_i32_0 : i32, i32
  }
  func.func @transform_7(%arg0: i32) -> (i32, i32) {
    %c0_i32 = arith.constant 0 : i32
    %c0_i32_0 = arith.constant 0 : i32
    %c0_i32_1 = arith.constant 0 : i32
    return %c0_i32, %c0_i32_0 : i32, i32
  }
  func.func @transform_8(%arg0: i32) -> (i32, i32, i32) {
    %c0_i32 = arith.constant 0 : i32
    %c0_i32_0 = arith.constant 0 : i32
    %c0_i32_1 = arith.constant 0 : i32
    return %c0_i32, %arg0, %c0_i32_0 : i32, i32, i32
  }
  func.func @transform_9(%arg0: i32) -> (i32, i32, i32) {
    %c0_i32 = arith.constant 0 : i32
    %c0_i32_0 = arith.constant 0 : i32
    %c0_i32_1 = arith.constant 0 : i32
    return %arg0, %c0_i32, %c0_i32_0 : i32, i32, i32
  }
}

module attributes {stable_mosaic.version = 11 : i64} {
  func.func @_bn_relu_pw2_kernel(%arg0: i32, %arg1: memref<2x16x128xf32, #tpu.memory_space<vmem>>, %arg2: memref<1x128xf32, #tpu.memory_space<vmem>>, %arg3: memref<1x128xf32, #tpu.memory_space<vmem>>, %arg4: memref<128x128xf32, #tpu.memory_space<vmem>>, %arg5: memref<1x128xf32, #tpu.memory_space<vmem>>, %arg6: memref<2x16x128xf32, #tpu.memory_space<vmem>>) attributes {dimension_semantics = [#tpu.dimension_semantics<parallel>], iteration_bounds = array<i64: 2>, scalar_prefetch = 0 : i64, scratch_operands = 0 : i64, tpu.core_type = #tpu.core_type<tc>, window_params = [{transform_indices = @transform_0, window_bounds = array<i64: 2, 16, 128>}, {pipeline_mode = #tpu.pipeline_mode<synchronous>, transform_indices = @transform_1, window_bounds = array<i64: 1, 128>}, {pipeline_mode = #tpu.pipeline_mode<synchronous>, transform_indices = @transform_2, window_bounds = array<i64: 1, 128>}, {pipeline_mode = #tpu.pipeline_mode<synchronous>, transform_indices = @transform_3, window_bounds = array<i64: 128, 128>}, {pipeline_mode = #tpu.pipeline_mode<synchronous>, transform_indices = @transform_4, window_bounds = array<i64: 1, 128>}, {transform_indices = @transform_5, window_bounds = array<i64: 2, 16, 128>}]} {
    %c0 = arith.constant 0 : index
    %c0_0 = arith.constant 0 : index
    %c0_1 = arith.constant 0 : index
    %0 = vector.load %arg1[%c0, %c0_0, %c0_1] : memref<2x16x128xf32, #tpu.memory_space<vmem>>, vector<2x16x128xf32>
    %c0_2 = arith.constant 0 : index
    %c0_3 = arith.constant 0 : index
    %1 = vector.load %arg2[%c0_2, %c0_3] : memref<1x128xf32, #tpu.memory_space<vmem>>, vector<1x128xf32>
    %2 = vector.shape_cast %1 : vector<1x128xf32> to vector<1x1x128xf32>
    %3 = vector.broadcast %2 : vector<1x1x128xf32> to vector<2x16x128xf32>
    %4 = arith.mulf %0, %3 : vector<2x16x128xf32>
    %c0_4 = arith.constant 0 : index
    %c0_5 = arith.constant 0 : index
    %5 = vector.load %arg3[%c0_4, %c0_5] : memref<1x128xf32, #tpu.memory_space<vmem>>, vector<1x128xf32>
    %6 = vector.shape_cast %5 : vector<1x128xf32> to vector<1x1x128xf32>
    %7 = vector.broadcast %6 : vector<1x1x128xf32> to vector<2x16x128xf32>
    %8 = arith.addf %4, %7 : vector<2x16x128xf32>
    %cst = arith.constant 0.000000e+00 : f32
    %9 = vector.broadcast %cst : f32 to vector<2x16x128xf32>
    %10 = arith.maximumf %8, %9 : vector<2x16x128xf32>
    %11 = vector.shape_cast %10 : vector<2x16x128xf32> to vector<32x128xf32>
    %c0_6 = arith.constant 0 : index
    %c0_7 = arith.constant 0 : index
    %12 = vector.load %arg4[%c0_6, %c0_7] : memref<128x128xf32, #tpu.memory_space<vmem>>, vector<128x128xf32>
    %cst_8 = arith.constant dense<0.000000e+00> : vector<32x128xf32>
    %13 = tpu.matmul %11, %12, %cst_8 {dimension_numbers = #tpu.dot_dimension_numbers<[1], [0], [0], [1], [0, 0, 1, 1], [], []>} : vector<32x128xf32>, vector<128x128xf32>, vector<32x128xf32> -> vector<32x128xf32>
    %c0_9 = arith.constant 0 : index
    %c0_10 = arith.constant 0 : index
    %14 = vector.load %arg5[%c0_9, %c0_10] : memref<1x128xf32, #tpu.memory_space<vmem>>, vector<1x128xf32>
    %15 = vector.broadcast %14 : vector<1x128xf32> to vector<32x128xf32>
    %16 = arith.addf %13, %15 : vector<32x128xf32>
    %17 = vector.shape_cast %16 : vector<32x128xf32> to vector<2x16x128xf32>
    %c0_11 = arith.constant 0 : index
    %c0_12 = arith.constant 0 : index
    %c0_13 = arith.constant 0 : index
    %18 = vector.load %arg6[%c0_11, %c0_12, %c0_13] : memref<2x16x128xf32, #tpu.memory_space<vmem>>, vector<2x16x128xf32>
    tpu.vector_store %arg6[%c0_11, %c0_12, %c0_13], %17 {strides = array<i32>} : memref<2x16x128xf32, #tpu.memory_space<vmem>>, vector<2x16x128xf32>,
    return
  }
  func.func @transform_0(%arg0: i32) -> (i32, i32, i32) {
    %c0_i32 = arith.constant 0 : i32
    %c0_i32_0 = arith.constant 0 : i32
    %c0_i32_1 = arith.constant 0 : i32
    return %c0_i32, %arg0, %c0_i32_0 : i32, i32, i32
  }
  func.func @transform_1(%arg0: i32) -> (i32, i32) {
    %c0_i32 = arith.constant 0 : i32
    %c0_i32_0 = arith.constant 0 : i32
    %c0_i32_1 = arith.constant 0 : i32
    return %c0_i32, %c0_i32_0 : i32, i32
  }
  func.func @transform_2(%arg0: i32) -> (i32, i32) {
    %c0_i32 = arith.constant 0 : i32
    %c0_i32_0 = arith.constant 0 : i32
    %c0_i32_1 = arith.constant 0 : i32
    return %c0_i32, %c0_i32_0 : i32, i32
  }
  func.func @transform_3(%arg0: i32) -> (i32, i32) {
    %c0_i32 = arith.constant 0 : i32
    %c0_i32_0 = arith.constant 0 : i32
    %c0_i32_1 = arith.constant 0 : i32
    return %c0_i32, %c0_i32_0 : i32, i32
  }
  func.func @transform_4(%arg0: i32) -> (i32, i32) {
    %c0_i32 = arith.constant 0 : i32
    %c0_i32_0 = arith.constant 0 : i32
    %c0_i32_1 = arith.constant 0 : i32
    return %c0_i32, %c0_i32_0 : i32, i32
  }
  func.func @transform_5(%arg0: i32) -> (i32, i32, i32) {
    %c0_i32 = arith.constant 0 : i32
    %c0_i32_0 = arith.constant 0 : i32
    %c0_i32_1 = arith.constant 0 : i32
    return %c0_i32, %arg0, %c0_i32_0 : i32, i32, i32
  }
}

</mosaic_0001>

<bundles_post_ra>
// kernel: causal_convolution_module.3
= control target key start
LH: loop header
LB: loop body
LE: loop exit
PB: predicated region body
PF: predicated region fallthrough
CT: control target
= control target key end

     0   :  { %10 = vsyncpa [#allocation4], 0  ;;  %s940_s0 = inlined_call_operand.vmem [shape: f32[2,32,128], index: 0, kind: input, shape index: {}]   ;;  %s941_s1 = inlined_call_operand.vmem [shape: f32[1,128], index: 1, kind: input, shape index: {}]   ;;  %s942_s2 = inlined_call_operand.vmem [shape: f32[1,128], index: 2, kind: input, shape index: {}]   ;;  %s943_s3 = inlined_call_operand.vmem [shape: f32[128,128], index: 3, kind: input, shape index: {}]   ;;  %s944_s4 = inlined_call_operand.vmem [shape: f32[1,128], index: 4, kind: input, shape index: {}]   ;;  %s945_s5 = inlined_call_operand.hbm [shape: f32[2,32,128], index: 5, kind: output, shape index: {}]  }
   0x1   :  { %12 = vsyncpa [#allocation4 + $0x1], 0  ;;  %s775_s18 = smov 0   ;;  %s777_s19 = smov 0  }
   0x2   :  { %s779_s20 = smov 0   ;;  %s781_s21 = smov 0  }
   0x3 LB: > { %s524_s22 = sadd.s32 4294967295, %s736_s21   ;;  %s525_s23 = sadd.s32 4294967294, %s736_s21   ;;  %s736_s21 = sphi %s781_s21, %s951_s21   ;;  %s732_s20 = sphi %s779_s20, %s950_s20   ;;  %s728_s19 = sphi %s777_s19, %s949_s19   ;;  %s724_s18 = sphi %s775_s18, %s948_s18  }
   0x4   : > { %s798_s24 = sadd.s32 1, %s736_s21   ;;  %s25_s25 = sadd.s32 1, %s732_s20 }
   0x5   : > { %s22_s26 = ssub.s32 %s736_s21, %s798_s24  ;;  %p32_p0 = scmp.ne.s32.totalorder %s732_s20, %s728_s19 }
   0x6   : > { %p23_p1 = scmp.eq.s32.totalorder %s22_s26, 0  ;;  %p33_p2 = scmp.eq.s32.totalorder %s736_s21, 0 }
   0x7   : > { %p146_p3 = scmp.eq.s32.totalorder %s524_s22, 1  ;;  %p151_p4 = scmp.ne.s32.totalorder %s728_s19, %s724_s18 }
   0x8   : > { %s811_s27 = scalar_select %p23_p1, %s732_s20, %s25_s25  }
   0x9   : > { %p34_p5 = por %p33_p2, %p32_p0  ;;  %p813_p6 = por %p146_p3, %p32_p0 }
   0xa   : > { %p152_p7 = scmp.eq.s32.totalorder %s525_s23, 1  ;;  %p527_p9 = scmp.ge.s32.totalorder %s736_s21, 2 }
   0xc   : > { %p817_p8 = por %p152_p7, %p151_p4  ;;  %180 = sbr.rel (%p527_p9) target bundleno = 26 (0x1a), region = 32 }
  0x13   : > { %183 = sbr.rel (!%p34_p5) target bundleno = 26 (0x1a), region = 36  ;;  %s185_s30 = sand.u32 (%p34_p5), 1, %s732_s20  }
  0x14   : > { %s542_s6 = sshll.u32 (%p34_p5), %s736_s21, 4  ;;  %s528_s7 = sshll.u32 (%p34_p5), %s185_s30, 5 }
  0x15   : > { %s190_s10 = scalar_lea.vmem (%p34_p5), %s940_s0, %s542_s6  ;;  %s187_s11 = scalar_lea.vmem (%p34_p5), [#allocation2], %s528_s7 }
  0x16   : > { %v224_v0 = vld [vmem:[%s190_s10] sm:$0xff] (%p34_p5)  ;;  %v226_v1 = vld [vmem:[%s190_s10 + $0x8] sm:$0xff] (%p34_p5) }
  0x17   : > { %v228_v2 = vld [vmem:[%s190_s10 + $0x20] sm:$0xff] (%p34_p5)  ;;  %225 = vst [vmem:[%s187_s11] sm:$0xff] (%p34_p5), %v224_v0  ;;  %227 = vst [vmem:[%s187_s11 + $0x8] sm:$0xff] (%p34_p5), %v226_v1  ;;  %v230_v3 = vld [vmem:[%s190_s10 + $0x28] sm:$0xff] (%p34_p5) }
  0x18   : > { %229 = vst [vmem:[%s187_s11 + $0x10] sm:$0xff] (%p34_p5), %v228_v2  ;;  %231 = vst [vmem:[%s187_s11 + $0x18] sm:$0xff] (%p34_p5), %v230_v3 }
  0x1a PF: > { %p531_p10 = scmp.ge.s32.totalorder %s736_s21, 1  ;;  %p236_p11 = scmp.lt.s32.totalorder %s736_s21, 3 }
  0x1c   : > { %p237_p12 = pnand %p531_p10, %p236_p11 }
  0x1d   : > { %v302_v4 = vld [vmem:[%s943_s3] sm:$0xff] (!%p237_p12)  ;;  %v303_v5 = vld [vmem:[%s943_s3 + $0x8] sm:$0xff] (!%p237_p12)  ;;  %v304_v6 = vld [vmem:[%s943_s3 + $0x10] sm:$0xff] (!%p237_p12)  ;;  %s243_s23 = sand.u32 (!%p237_p12), 1, %s728_s19  }
  0x1e   : > { %240 = sbr.rel (%p237_p12) target bundleno = 289 (0x121), region = 74  ;;  %v602_v7 = vpack.c.bf16 (!%p237_p12), %v303_v5, %v302_v4  ;;  %v305_v8 = vld [vmem:[%s943_s3 + $0x18] sm:$0xff] (!%p237_p12)  ;;  %s846_s30 = sshll.u32 (!%p237_p12), %s243_s23, 5  ;;  %v306_v10 = vld [vmem:[%s943_s3 + $0x20] sm:$0xff] (!%p237_p12)  ;;  %v307_v11 = vld [vmem:[%s943_s3 + $0x28] sm:$0xff] (!%p237_p12) }
  0x1f   : > { %v606_v9 = vpack.c.bf16 (!%p237_p12), %v305_v8, %v304_v6  ;;  %v610_v12 = vpack.c.bf16 (!%p237_p12), %v307_v11, %v306_v10  ;;  %v308_v13 = vld [vmem:[%s943_s3 + $0x30] sm:$0xff] (!%p237_p12)  ;;  %s858_s12 = scalar_lea.vmem (!%p237_p12), [#allocation2], %s846_s30  ;;  %v534_v15 = vld [vmem:[%s941_s1] ss:$0 sm:$0xff] (!%p237_p12)  ;;  %v309_v16 = vld [vmem:[%s943_s3 + $0x38] sm:$0xff] (!%p237_p12)  ;;  %s269_s9 = scalar_lea.vmem (!%p237_p12), [#allocation3], %s846_s30 }
  0x20   : > { %603 = vmatprep.subr.bf16.mxu0 (!%p237_p12), %v602_v7  ;;  %634 = vmatprep.subr.bf16.mxu1 (!%p237_p12), %v602_v7  ;;  %v272_v14 = vld [vmem:[%s858_s12] sm:$0xff] (!%p237_p12)  ;;  %v274_v19 = vld [vmem:[%s858_s12 + $0x10] sm:$0xff] (!%p237_p12)  ;;  %v614_v22 = vpack.c.bf16 (!%p237_p12), %v309_v16, %v308_v13  ;;  %v311_v25 = vld [vmem:[%s943_s3 + $0x48] sm:$0xff] (!%p237_p12)  ;;  %s415_s10 = scalar_lea.sflag (!%p237_p12), [#allocation4], %s243_s23 }
  0x21   : > { %605 = vmatpush3.bf16.msra.mxu0 (!%p237_p12), %v602_v7  ;;  %642 = vmatpush3.bf16.msra.mxu1 (!%p237_p12), %v602_v7  ;;  %v283_v17 = vmul.f32 (!%p237_p12), %v534_v15, %v272_v14  ;;  %v535_v18 = vld [vmem:[%s942_s2] ss:$0 sm:$0xff] (!%p237_p12)  ;;  %v285_v20 = vmul.f32 (!%p237_p12), %v534_v15, %v274_v19  ;;  %v312_v29 = vld [vmem:[%s943_s3 + $0x50] sm:$0xff] (!%p237_p12)  ;;  %v313_v30 = vld [vmem:[%s943_s3 + $0x58] sm:$0xff] (!%p237_p12) }
  0x22   : > { %607 = vmatprep.subr.bf16.mxu0 (!%p237_p12), %v606_v9  ;;  %635 = vmatprep.subr.bf16.mxu1 (!%p237_p12), %v606_v9  ;;  %v310_v24 = vld [vmem:[%s943_s3 + $0x40] sm:$0xff] (!%p237_p12)  ;;  %v622_v31 = vpack.c.bf16 (!%p237_p12), %v313_v30, %v312_v29  ;;  %v315_v33 = vld [vmem:[%s943_s3 + $0x68] sm:$0xff] (!%p237_p12)  ;;  %v275_v35 = vld [vmem:[%s858_s12 + $0x18] sm:$0xff] (!%p237_p12) }
  0x23   : > { %v294_v21 = vadd.f32 (!%p237_p12), %v535_v18, %v283_v17  ;;  %v296_v23 = vadd.f32 (!%p237_p12), %v535_v18, %v285_v20  ;;  %v618_v28 = vpack.c.bf16 (!%p237_p12), %v311_v25, %v310_v24  ;;  %v314_v32 = vld [vmem:[%s943_s3 + $0x60] sm:$0xff] (!%p237_p12)  ;;  %v273_v34 = vld [vmem:[%s858_s12 + $0x8] sm:$0xff] (!%p237_p12)  ;;  %v316_v37 = vld [vmem:[%s943_s3 + $0x70] sm:$0xff] (!%p237_p12)  ;;  %v286_v40 = vmul.f32 (!%p237_p12), %v534_v15, %v275_v35 }
  0x24   : > { %v626_v36 = vpack.c.bf16 (!%p237_p12), %v315_v33, %v314_v32  ;;  %v317_v38 = vld [vmem:[%s943_s3 + $0x78] sm:$0xff] (!%p237_p12)  ;;  %v284_v39 = vmul.f32 (!%p237_p12), %v534_v15, %v273_v34  ;;  %v536_v46 = vld [vmem:[%s944_s4] ss:$0 sm:$0xff] (!%p237_p12) }
  0x25   : > { %609 = vmatpush3.bf16.msra.mxu0 %v606_v9  ;;  %643 = vmatpush3.bf16.msra.mxu1 %v606_v9  ;;  %v298_v26 = vmax.f32 %v294_v21, 0.0  ;;  %v300_v27 = vmax.f32 %v296_v23, 0.0  ;;  %v630_v41 = vpack.c.bf16 %v317_v38, %v316_v37  ;;  %v297_v43 = vadd.f32 %v535_v18, %v286_v40 }
  0x26   : > { %611 = vmatprep.subr.bf16.mxu0 %v610_v12  ;;  %636 = vmatprep.subr.bf16.mxu1 %v610_v12  ;;  %v295_v42 = vadd.f32 %v535_v18, %v284_v39 }
  0x27   : > { %596 = vmatprep.mubr.f32.mxu0 %v298_v26  ;;  %599 = vmatprep.mubr.f32.mxu1 %v300_v27  ;;  %v301_v45 = vmax.f32 %v297_v43, 0.0 }
  0x28   : > { %v299_v44 = vmax.f32 %v295_v42, 0.0 }
  0x29   : > { %613 = vmatpush3.bf16.msra.mxu0 %v610_v12  ;;  %644 = vmatpush3.bf16.msra.mxu1 %v610_v12 }
  0x2a   : > { %615 = vmatprep.subr.bf16.mxu0 %v614_v22  ;;  %637 = vmatprep.subr.bf16.mxu1 %v614_v22 }
  0x2d   : > { %617 = vmatpush3.bf16.msra.mxu0 %v614_v22  ;;  %645 = vmatpush3.bf16.msra.mxu1 %v614_v22 }
  0x2e   : > { %619 = vmatprep.subr.bf16.mxu0 %v618_v28  ;;  %638 = vmatprep.subr.bf16.mxu1 %v618_v28 }
  0x31   : > { %621 = vmatpush3.bf16.msra.mxu0 %v618_v28  ;;  %646 = vmatpush3.bf16.msra.mxu1 %v618_v28 }
  0x32   : > { %623 = vmatprep.subr.bf16.mxu0 %v622_v31  ;;  %639 = vmatprep.subr.bf16.mxu1 %v622_v31 }
  0x35   : > { %625 = vmatpush3.bf16.msra.mxu0 %v622_v31  ;;  %647 = vmatpush3.bf16.msra.mxu1 %v622_v31 }
  0x36   : > { %627 = vmatprep.subr.bf16.mxu0 %v626_v36  ;;  %640 = vmatprep.subr.bf16.mxu1 %v626_v36 }
  0x39   : > { %629 = vmatpush3.bf16.msra.mxu0 %v626_v36  ;;  %648 = vmatpush3.bf16.msra.mxu1 %v626_v36 }
  0x3a   : > { %631 = vmatprep.subr.bf16.mxu0 %v630_v41  ;;  %641 = vmatprep.subr.bf16.mxu1 %v630_v41 }
  0x3d   : > { %633 = vmatpush3.bf16.msra.mxu0 %v630_v41  ;;  %649 = vmatpush3.bf16.msra.mxu1 %v630_v41 }
  0x40   : > { %597 = vmatmul.mubr.f32.vlgmr.msra.gmra.mrb[0].mxu0 %v299_v44  ;;  %600 = vmatmul.mubr.f32.vlgmr.msra.gmra.mrb[0].mxu1 %v301_v45 }
 0x113   : > { %v598_v47 = vpop.f32.mrb[0].mxu0  ;;  %v601_v48 = vpop.f32.mrb[0].mxu1 }
 0x114   : > { %v397_v49 = vadd.f32 %v598_v47, %v536_v46  ;;  %v407_v50 = vadd.f32 %v601_v48, %v536_v46  ;;  %v391_v51 = vpop.f32.mrb[1].mxu0  ;;  %v401_v52 = vpop.f32.mrb[1].mxu1 }
 0x115   : > { %v392_v53 = vadd.f32 %v536_v46, %v391_v51  ;;  %v402_v54 = vadd.f32 %v536_v46, %v401_v52 }
 0x116   : > { %411 = vst [vmem:[%s269_s9 + $0x8] sm:$0xff] %v397_v49  ;;  %413 = vst [vmem:[%s269_s9 + $0x18] sm:$0xff] %v407_v50 }
 0x117   : > { %410 = vst [vmem:[%s269_s9] sm:$0xff] %v392_v53  ;;  %412 = vst [vmem:[%s269_s9 + $0x10] sm:$0xff] %v402_v54 }
 0x118   : > { %s543_s11 = sshll.u32 %s524_s22, 8  ;;  %s444_s13 = sshll.u32 %s269_s9, 4  ;;  %s445_s13 = int_to_ptr.vmem [resolvable:$true] %s444_s13 }
 0x119   : > { %s427_s30 = scalar_lea.hbm %s945_s5, %s543_s11  ;;  %s738_s16 = smov 256  }
 0x11a   : > { %650 = sst [smem:[#allocation6]] (%p813_p6), %s738_s16  ;;  %s739_s23 = smov 512  }
 0x11b   : > { %651 = sst [smem:[#allocation6 + $0x1]] (%p813_p6), %s739_s23  ;;  %s740_s17 = smov 2  }
 0x11c   : > { %652 = sst [smem:[#allocation6 + $0x2]] (%p813_p6), %s740_s17  ;;  %s741_s25 = smov 128  }
 0x11d   : > { %653 = sst [smem:[#allocation6 + $0x3]] (%p813_p6), %s741_s25  ;;  %s742_s22 = smov 8  }
 0x11e   : > { %654 = sst [smem:[#allocation6 + $0x4]] (%p813_p6), %s741_s25  ;;  %s743_s26 = smov [#allocation5]  }
 0x11f   : > { %655 = sst [smem:[#allocation6 + $0x5]] (%p813_p6), %s742_s22  ;;  %s744_s6 = smov 0  }
 0x120   : > { %656 = dma.general (%p813_p6), %s445_s13, 512, %s427_s30, %s415_s10, %s743_s26, [#allocation6], %s744_s6, 0  }
 0x121 PF: > { %s472_s7 = sand.u32 1, %s724_s18   ;;  %p659_p13 = pnand %p527_p9, %p817_p8 }
 0x122   : > { %s473_s12 = scalar_lea.sflag [#allocation4], %s472_s7 }
 0x123   : > { %719 = dma.done.wait (!%p659_p13), %s473_s12, 512  }
 0x124   : > { %721 = vsyncadd (!%p659_p13), %s473_s12, 4294966784  ;;  %p15_p0 = scmp.ge.s32.totalorder %s798_s24, 4   ;;  %s948_s18 = smov %s728_s19 }
 0x125   : > { %s949_s19 = smov %s732_s20  ;;  %s950_s20 = smov %s811_s27 }
 0x126   : > { %s951_s21 = smov %s798_s24  ;;  %17 = sbr.rel (!%p15_p0) target bundleno = 3 (0x3), region = 123 }
 0x12d   :  { %478 = vsyncpa [#allocation4], 1 }
 0x12e   :  { %480 = vsyncpa [#allocation4 + $0x1], 1 }

// kernel: causal_convolution_module.2
= control target key start
LH: loop header
LB: loop body
LE: loop exit
PB: predicated region body
PF: predicated region fallthrough
CT: control target
= control target key end

     0   :  { %s2158_s0 = inlined_call_operand.vmem [shape: f32[2,32,128], index: 0, kind: input, shape index: {}]   ;;  %s2159_s1 = inlined_call_operand.vmem [shape: f32[2,2,2,128], index: 1, kind: input, shape index: {}]   ;;  %s2160_s2 = inlined_call_operand.hbm [shape: f32[128,128], index: 2, kind: input, shape index: {}]   ;;  %s2161_s3 = inlined_call_operand.vmem [shape: f32[1,128], index: 3, kind: input, shape index: {}]   ;;  %s2162_s4 = inlined_call_operand.hbm [shape: f32[128,128], index: 4, kind: input, shape index: {}]   ;;  %s2163_s5 = inlined_call_operand.hbm [shape: f32[1,128], index: 5, kind: input, shape index: {}]   ;;  %s2164_s6 = inlined_call_operand.vmem [shape: f32[3,128], index: 6, kind: input, shape index: {}]   ;;  %s2165_s7 = inlined_call_operand.hbm [shape: f32[1,128], index: 7, kind: input, shape index: {}]   ;;  %s2166_s8 = inlined_call_operand.vmem [shape: f32[2,32,128], index: 8, kind: output, shape index: {0}]   ;;  %s2167_s9 = inlined_call_operand.vmem [shape: f32[2,2,128], index: 9, kind: output, shape index: {1}]  }
   0x1   :  { %2173 = sst [smem:[#allocation18_spill]] %s2166_s8 }
   0x2   :  { %15 = vsyncpa [#allocation5], 0 }
   0x3   :  { %16 = vsyncpa [#allocation7], 0 }
   0x4   :  { %17 = vsyncpa [#allocation10], 0  ;;  %s1842_s30 = smov 0   ;;  %s1844_s10 = smov 0  }
   0x5   :  { %s1846_s11 = smov 0  }
   0x6 LB: > { %s1858_s12 = sadd.s32 4294967295, %s1780_s11   ;;  %s1861_s13 = sadd.s32 1, %s1780_s11   ;;  %s1780_s11 = sphi %s1846_s11, %s2193_s11   ;;  %s1776_s10 = sphi %s1844_s10, %s2196_s10   ;;  %s1772_s30 = sphi %s1842_s30, %s2195_s30  }
   0x7   : > { %2174 = sst [smem:[#allocation15_spill]] %s1861_s13  ;;  %s27_s14 = ssub.s32 %s1780_s11, %s1861_s13 }
   0x8   : > { %s30_s15 = sadd.s32 1, %s1776_s10  ;;  %p28_p0 = scmp.eq.s32.totalorder %s27_s14, 0 }
   0x9   : > { %p37_p1 = scmp.ne.s32.totalorder %s1776_s10, %s1772_s30  ;;  %p38_p2 = scmp.eq.s32.totalorder %s1780_s11, 0 }
   0xa   : > { %p219_p3 = scmp.eq.s32.totalorder %s1858_s12, 1  ;;  %p1174_p6 = scmp.ge.s32.totalorder %s1780_s11, 1 }
   0xb   : > { %s1871_s16 = scalar_select %p28_p0, %s1776_s10, %s30_s15  }
   0xc   : > { %p1873_p4 = por %p38_p2, %p37_p1  ;;  %p1877_p5 = por %p219_p3, %p37_p1 }
   0xd   : > { %2175 = sst [smem:[#allocation16_spill]] %s1871_s16  ;;  %p258_p7 = scmp.lt.s32.totalorder %s1780_s11, 3 }
   0xe   : > { %s2176_s17 = scalar_select %p1873_p4, 1, 0 }
   0xf   : > { %s2177_s18 = scalar_select %p1877_p5, 1, 0 }
  0x10   : > { %p2168_p8 = scmp.eq.s32.totalorder %s1858_s12, 0  ;;  %p1884_p9 = pnand %p1174_p6, %p258_p7 }
  0x11   : > { %2178 = sst [smem:[#allocation17_spill]] %s2177_s18  ;;  %s1782_s20 = smov [#allocation6]  }
  0x12   : > { %s2179_s19 = scalar_select %p1884_p9, 1, 0 }
  0x13   : > { %p1559_p10 = pneg %p1884_p9  ;;  %s286_s21 = sshll.u32 %s1782_s20, 4  ;;  %s1890_s21 = int_to_ptr.vmem [resolvable:$true] %s286_s21 }
  0x14   : > { %s1783_s23 = smov [#allocation4]   ;;  %s1784_s25 = smov [#allocation8]  }
  0x15   : > { %p1894_p11 = pnand %p2168_p8, %p1559_p10  ;;  %s270_s24 = sshll.u32 %s1783_s23, 4  ;;  %s1898_s24 = int_to_ptr.vmem [resolvable:$true] %s270_s24 }
  0x16   : > { %s1900_s26 = sshll.u32 %s1784_s25, 4  ;;  %s1634_s29 = scalar_lea.hbm %s2162_s4, 2048  ;;  %s301_s26 = int_to_ptr.vmem [resolvable:$true] %s1900_s26 }
  0x17   : > { %p1635_p12 = scmp.ne.s32.totalorder %s2162_s4, %s1634_s29  ;;  %p1910_p13 = pneg %p1894_p11 }
  0x18   : > { %p1641_p2 = scmp.lt.u32.totalorder %s1634_s29, %s2162_s4 }
  0x19   : > { %p1637_p0 = pnand %p1910_p13, %p1635_p12 }
  0x1b   : > { %p1638_p1 = pneg %p1637_p0 }
  0x1d   : > { %p1643_p3 = pnand %p1641_p2, %p1638_p1 }
  0x1f   : > { %1646 = shalt.err (!%p1643_p3)
}
  0x20   : > { %s1647_s27 = scalar_lea.vmem %s1890_s21, 2048  ;;  %p1655_p8 = scmp.lt.s32.totalorder %s1890_s21, %s1890_s21 }
  0x21   : > { %p1648_p6 = scmp.ne.s32.totalorder %s1890_s21, %s1647_s27  ;;  %p1656_p5 = scmp.lt.s32.totalorder %s1647_s27, %s1647_s27 }
  0x23   : > { %p1650_p7 = pnand %p1648_p6, %p1910_p13  ;;  %p1657_p12 = por %p1656_p5, %p1655_p8 }
  0x25   : > { %p1651_p10 = pneg %p1650_p7 }
  0x27   : > { %p1658_p0 = pnand %p1657_p12, %p1651_p10 }
  0x29   : > { %1661 = shalt.err (!%p1658_p0)
}
  0x2a   : > { %s1785_s28 = smov 128   ;;  %s1786_s29 = smov 8  }
  0x2b   : > { %1565 = dma.hbm_to_vmem [thread:$0]  (!%p1894_p11), %s2162_s4, 2048, %s1890_s21, [#allocation7], %s1785_s28, %s1785_s28, %s1786_s29  }
  0x2c   : > { %s1662_s16 = scalar_lea.hbm %s2160_s2, 2048 }
  0x2d   : > { %p1663_p5 = scmp.ne.s32.totalorder %s2160_s2, %s1662_s16  ;;  %p1669_p2 = scmp.lt.u32.totalorder %s1662_s16, %s2160_s2 }
  0x2f   : > { %p1665_p8 = pnand %p1663_p5, %p1910_p13 }
  0x31   : > { %p1666_p1 = pneg %p1665_p8 }
  0x33   : > { %p1671_p3 = pnand %p1669_p2, %p1666_p1 }
  0x35   : > { %1674 = shalt.err (!%p1671_p3)
}
  0x36   : > { %s1675_s21 = scalar_lea.vmem %s1898_s24, 2048  ;;  %p1683_p12 = scmp.lt.s32.totalorder %s1898_s24, %s1898_s24 }
  0x37   : > { %p1676_p6 = scmp.ne.s32.totalorder %s1898_s24, %s1675_s21  ;;  %p1684_p0 = scmp.lt.s32.totalorder %s1675_s21, %s1675_s21 }
  0x39   : > { %p1678_p7 = pnand %p1676_p6, %p1910_p13  ;;  %p1685_p5 = por %p1684_p0, %p1683_p12 }
  0x3b   : > { %p1679_p10 = pneg %p1678_p7 }
  0x3d   : > { %p1686_p8 = pnand %p1685_p5, %p1679_p10 }
  0x3f   : > { %1689 = shalt.err (!%p1686_p8)
}
  0x40   : > { %1562 = dma.hbm_to_vmem [thread:$0]  (!%p1894_p11), %s2160_s2, 2048, %s1898_s24, [#allocation5], %s1785_s28, %s1785_s28, %s1786_s29  }
  0x41   : > { %s1690_s14 = scalar_lea.hbm %s2163_s5, 16 }
  0x42   : > { %p1691_p1 = scmp.ne.s32.totalorder %s2163_s5, %s1690_s14  ;;  %p1697_p6 = scmp.lt.u32.totalorder %s1690_s14, %s2163_s5 }
  0x44   : > { %p1693_p2 = pnand %p1691_p1, %p1910_p13 }
  0x46   : > { %p1694_p3 = pneg %p1693_p2 }
  0x48   : > { %p1699_p7 = pnand %p1697_p6, %p1694_p3 }
  0x4a   : > { %1702 = shalt.err (!%p1699_p7)
}
  0x4b   : > { %s1703_s21 = scalar_lea.vmem %s301_s26, 16  ;;  %s1710_s24 = scalar_lea.vmem %s301_s26, 32 }
  0x4c   : > { %p1704_p10 = scmp.ne.s32.totalorder %s301_s26, %s1703_s21  ;;  %p1711_p5 = scmp.lt.s32.totalorder %s301_s26, %s301_s26 }
  0x4d   : > { %p1712_p8 = scmp.lt.s32.totalorder %s1710_s24, %s1703_s21 }
  0x4e   : > { %p1706_p12 = pnand %p1704_p10, %p1910_p13 }
  0x4f   : > { %p1713_p9 = por %p1712_p8, %p1711_p5 }
  0x50   : > { %p1707_p0 = pneg %p1706_p12 }
  0x52   : > { %p1714_p4 = pnand %p1713_p9, %p1707_p0 }
  0x54   : > { %1717 = shalt.err (!%p1714_p4)
}
  0x55   : > { %1568 = dma.hbm_to_vmem [thread:$0]  (!%p1894_p11), %s2163_s5, 16, %s301_s26, [#allocation7]  }
  0x56   : > { %s1787_s8 = smov [#allocation9]   ;;  %s1718_s14 = scalar_lea.hbm %s2165_s7, 16 }
  0x57   : > { %s314_s13 = sshll.u32 %s1787_s8, 4  ;;  %p1719_p1 = scmp.ne.s32.totalorder %s2165_s7, %s1718_s14  ;;  %s315_s13 = int_to_ptr.vmem [resolvable:$true] %s314_s13 }
  0x58   : > { %p1725_p2 = scmp.lt.u32.totalorder %s1718_s14, %s2165_s7 }
  0x59   : > { %p1721_p4 = pnand %p1719_p1, %p1910_p13 }
  0x5b   : > { %p1722_p9 = pneg %p1721_p4 }
  0x5d   : > { %p1727_p3 = pnand %p1725_p2, %p1722_p9 }
  0x5f   : > { %1730 = shalt.err (!%p1727_p3)
}
  0x60   : > { %s1731_s26 = scalar_lea.vmem %s315_s13, 16  ;;  %s1738_s21 = scalar_lea.vmem %s315_s13, 32 }
  0x61   : > { %p1732_p6 = scmp.ne.s32.totalorder %s315_s13, %s1731_s26  ;;  %p1739_p12 = scmp.lt.s32.totalorder %s315_s13, %s315_s13 }
  0x62   : > { %p1740_p0 = scmp.lt.s32.totalorder %s1738_s21, %s1731_s26 }
  0x63   : > { %p1734_p7 = pnand %p1732_p6, %p1910_p13 }
  0x64   : > { %p1741_p5 = por %p1740_p0, %p1739_p12 }
  0x65   : > { %p1735_p10 = pneg %p1734_p7 }
  0x67   : > { %p1742_p8 = pnand %p1741_p5, %p1735_p10 }
  0x69   : > { %1745 = shalt.err (!%p1742_p8)
}
  0x6a   : > { %1571 = dma.hbm_to_vmem [thread:$0]  (!%p1894_p11), %s2165_s7, 16, %s315_s13, [#allocation10]  }
  0x6b   : > { %p1179_p1 = scmp.ge.s32.totalorder %s1780_s11, 2 }
  0x6c   : > { %p2182_p4 = scmp.ne.s32.totalorder (!%p1179_p1), %s2176_s17, 0 }
  0x6d   : > { %321 = sbr.rel (%p1179_p1) target bundleno = 123 (0x7b), region = 40 }
  0x74   : > { %324 = sbr.rel (!%p2182_p4) target bundleno = 123 (0x7b), region = 44  ;;  %s326_s20 = sand.u32 (%p2182_p4), 1, %s1776_s10  }
  0x75   : > { %s1208_s29 = sshll.u32 (%p2182_p4), %s1780_s11, 4  ;;  %s1180_s8 = sshll.u32 (%p2182_p4), %s326_s20, 5 }
  0x76   : > { %s331_s14 = scalar_lea.vmem (%p2182_p4), %s2158_s0, %s1208_s29  ;;  %s328_s22 = scalar_lea.vmem (%p2182_p4), [#allocation3], %s1180_s8 }
  0x77   : > { %v365_v0 = vld [vmem:[%s331_s14] sm:$0xff] (%p2182_p4)  ;;  %v367_v1 = vld [vmem:[%s331_s14 + $0x8] sm:$0xff] (%p2182_p4) }
  0x78   : > { %v369_v2 = vld [vmem:[%s331_s14 + $0x20] sm:$0xff] (%p2182_p4)  ;;  %366 = vst [vmem:[%s328_s22] sm:$0xff] (%p2182_p4), %v365_v0  ;;  %368 = vst [vmem:[%s328_s22 + $0x8] sm:$0xff] (%p2182_p4), %v367_v1  ;;  %v371_v3 = vld [vmem:[%s331_s14 + $0x28] sm:$0xff] (%p2182_p4) }
  0x79   : > { %370 = vst [vmem:[%s328_s22 + $0x10] sm:$0xff] (%p2182_p4), %v369_v2  ;;  %372 = vst [vmem:[%s328_s22 + $0x18] sm:$0xff] (%p2182_p4), %v371_v3 }
  0x7b PF: > { %p2183_p11 = scmp.ne.s32.totalorder %s2179_s19, 0 }
  0x7c   : > { %s392_s11 = sand.u32 (!%p2183_p11), 1, %s1772_s30   ;;  %p2184_p13 = scmp.eq.s32.totalorder (!%p2183_p11), %s1858_s12, 0 }
  0x7d   : > { %389 = sbr.rel (%p2183_p11) target bundleno = 489 (0x1e9), region = 86  ;;  %s2002_s17 = sshll.u32 (!%p2183_p11), %s392_s11, 5 }
  0x7e   : > { %s2005_s13 = scalar_lea.vmem (!%p2183_p11), [#allocation3], %s2002_s17 }
  0x84   : > { %1759 = dma.done.wait (%p2184_p13), [#allocation5], 2048   ;;  %p2185_p9 = pmov %p2184_p13 }
  0x86   : > { %1761 = vsyncadd (%p2185_p9), [#allocation5], 4294965248  ;;  %p2186_p2 = pmov %p2185_p9 }
  0x88   : > { %1763 = dma.done.wait (%p2186_p2), [#allocation7], 2064   ;;  %p2187_p3 = pmov %p2186_p2 }
  0x89   : > { %p2188_p6 = pmov %p2186_p2 }
  0x8a   : > { %1765 = vsyncadd (%p2187_p3), [#allocation7], 4294965232 }
  0x8b   : > { %1767 = dma.done.wait (%p2188_p6), [#allocation10], 16   ;;  %p2189_p7 = pmov %p2186_p2 }
  0x8c   : > { %v478_v4 = vld [vmem:[#allocation6] sm:$0xff]  ;;  %v479_v5 = vld [vmem:[#allocation6 + $0x8] sm:$0xff]  ;;  %v480_v6 = vld [vmem:[#allocation6 + $0x10] sm:$0xff]  ;;  %v1788_v54 = vmov 0.0|0.0   ;;  %vm1789_vm0 = vmmov 0   ;;  %v1790_v57 = vmov 0.0   ;;  %v722_v60 = vlaneseq }
  0x8d   : > { %1769 = vsyncadd (%p2189_p7), [#allocation10], 4294967280  ;;  %v2019_v7 = vpack.c.bf16 %v479_v5, %v478_v4  ;;  %v481_v8 = vld [vmem:[#allocation6 + $0x18] sm:$0xff]  ;;  %v482_v10 = vld [vmem:[#allocation6 + $0x20] sm:$0xff]  ;;  %p452_p10 = scmp.lt.s32.totalorder %s1858_s12, 1  ;;  %s2128_s28 = scalar_lea.vmem [#allocation11], %s2002_s17 }
  0x8e   : > { %v2021_v9 = vpack.c.bf16 %v481_v8, %v480_v6  ;;  %v483_v11 = vld [vmem:[#allocation6 + $0x28] sm:$0xff]  ;;  %v462_v12 = vld [vmem:[#allocation4] sm:$0xff]  ;;  %v484_v14 = vld [vmem:[#allocation6 + $0x30] sm:$0xff]  ;;  %v1791_v58 = vmov 1983009808   ;;  %v2104_v62 = vshrl.u32 %v722_v60, 7 }
  0x8f   : > { %1464 = vmatprep.subr.bf16.mxu1 %v2019_v7  ;;  %v2026_v13 = vpack.c.bf16 %v483_v11, %v482_v10  ;;  %v485_v15 = vld [vmem:[#allocation6 + $0x38] sm:$0xff]  ;;  %v463_v16 = vld [vmem:[#allocation4 + $0x8] sm:$0xff]  ;;  %v464_v18 = vld [vmem:[#allocation4 + $0x10] sm:$0xff]  ;;  %s2094_s30 = scalar_select %p452_p10, %s1858_s12, 1  ;;  %v720_v59 = vunpack.c.l.s4 %v1791_v58  ;;  %vm975_vm1 = vcmask 1040384  }
  0x90   : > { %1466 = vmatpush3.bf16.msra.mxu1 %v2019_v7  ;;  %v2028_v17 = vpack.c.bf16 %v463_v16, %v462_v12  ;;  %v465_v19 = vld [vmem:[#allocation4 + $0x18] sm:$0xff]  ;;  %v496_v20 = vld [vmem:[%s2005_s13] sm:$0xff]  ;;  %v467_v23 = vld [vmem:[#allocation4 + $0x28] sm:$0xff]  ;;  %v2036_v24 = vpack.c.bf16 %v485_v15, %v484_v14  ;;  %s2190_s18 = sld [smem:[#allocation17_spill]] }
  0x91   : > { %1468 = vmatprep.subr.bf16.mxu1 %v2021_v9  ;;  %v2031_v21 = vpack.c.bf16 %v465_v19, %v464_v18  ;;  %1355 = vmatprep.mubr.f32.mxu1 %v496_v20  ;;  %v466_v22 = vld [vmem:[#allocation4 + $0x20] sm:$0xff]  ;;  %v487_v26 = vld [vmem:[#allocation6 + $0x48] sm:$0xff]  ;;  %v468_v28 = vld [vmem:[#allocation4 + $0x30] sm:$0xff]  ;;  %s1209_s19 = sshll.u32 %s2094_s30, 2  ;;  %v721_v61 = vunpack.c.0.s8 %v720_v59  ;;  %s1192_s20 = sshll.u32 %s2094_s30, 1 }
  0x92   : > { %1317 = vmatprep.mubr.f32.mxu0 %v496_v20  ;;  %1432 = vmatprep.subr.bf16.mxu0 %v2028_v17  ;;  %v486_v25 = vld [vmem:[#allocation6 + $0x40] sm:$0xff]  ;;  %v2040_v27 = vpack.c.bf16 %v467_v23, %v466_v22  ;;  %v469_v29 = vld [vmem:[#allocation4 + $0x38] sm:$0xff]  ;;  %v488_v31 = vld [vmem:[#allocation6 + $0x50] sm:$0xff]  ;;  %s456_s25 = scalar_lea.vmem %s2159_s1, %s1209_s19  ;;  %s461_s16 = scalar_lea.vmem %s2167_s9, %s1192_s20 }
  0x93   : > { %1434 = vmatpush3.bf16.msra.mxu0 %v2028_v17  ;;  %v2044_v30 = vpack.c.bf16 %v487_v26, %v486_v25  ;;  %v489_v32 = vld [vmem:[#allocation6 + $0x58] sm:$0xff]  ;;  %v2048_v33 = vpack.c.bf16 %v469_v29, %v468_v28  ;;  %v470_v34 = vld [vmem:[#allocation4 + $0x40] sm:$0xff]  ;;  %v471_v35 = vld [vmem:[#allocation4 + $0x48] sm:$0xff]  ;;  %v2109_v2 = vsub.s32 %v721_v61, %v2104_v62 }
  0x94   : > { %1470 = vmatpush3.bf16.msra.mxu1 %v2021_v9  ;;  %1436 = vmatprep.subr.bf16.mxu0 %v2031_v21  ;;  %v2052_v36 = vpack.c.bf16 %v489_v32, %v488_v31  ;;  %v490_v37 = vld [vmem:[#allocation6 + $0x60] sm:$0xff]  ;;  %v491_v38 = vld [vmem:[#allocation6 + $0x68] sm:$0xff]  ;;  %v2056_v39 = vpack.c.bf16 %v471_v35, %v470_v34  ;;  %v472_v40 = vld [vmem:[#allocation4 + $0x50] sm:$0xff] }
  0x95   : > { %1472 = vmatprep.subr.bf16.mxu1 %v2026_v13  ;;  %v473_v41 = vld [vmem:[#allocation4 + $0x58] sm:$0xff]  ;;  %v2060_v42 = vpack.c.bf16 %v491_v38, %v490_v37  ;;  %v492_v43 = vld [vmem:[#allocation6 + $0x70] sm:$0xff]  ;;  %v474_v46 = vld [vmem:[#allocation4 + $0x60] sm:$0xff] }
  0x96   : > { %v493_v44 = vld [vmem:[#allocation6 + $0x78] sm:$0xff]  ;;  %v2064_v45 = vpack.c.bf16 %v473_v41, %v472_v40  ;;  %v475_v47 = vld [vmem:[#allocation4 + $0x68] sm:$0xff]  ;;  %v476_v50 = vld [vmem:[#allocation4 + $0x70] sm:$0xff]  ;;  %p2191_p12 = scmp.ne.s32.totalorder %s2190_s18, 0 }
  0x97   : > { %1438 = vmatpush3.bf16.msra.mxu0 %v2031_v21  ;;  %v2068_v48 = vpack.c.bf16 %v493_v44, %v492_v43  ;;  %v2072_v49 = vpack.c.bf16 %v475_v47, %v474_v46  ;;  %v477_v51 = vld [vmem:[#allocation4 + $0x78] sm:$0xff]  ;;  %v497_v53 = vld [vmem:[%s2005_s13 + $0x8] sm:$0xff]  ;;  %v498_v55 = vld [vmem:[%s2005_s13 + $0x10] sm:$0xff]  ;;  %v896_v43 = vsub.s32 0, %v2104_v62  ;;  %s1210_s14 = sshll.u32 (%p2191_p12), %s1858_s12, 4  ;;  %s2192_s17 = sld [smem:[#allocation18_spill]] (%p2191_p12) }
  0x98   : > { %1474 = vmatpush3.bf16.msra.mxu1 %v2026_v13  ;;  %1440 = vmatprep.subr.bf16.mxu0 %v2040_v27  ;;  %v2078_v52 = vpack.c.bf16 %v477_v51, %v476_v50  ;;  %v499_v56 = vld [vmem:[%s2005_s13 + $0x18] sm:$0xff]  ;;  %v714_v63 = vld [vmem:[%s456_s25] sm:$0x3]  ;;  %v715_v0 = vld [vmem:[%s456_s25 + $0x2] sm:$0x3] }
  0x99   : > { %1476 = vmatprep.subr.bf16.mxu1 %v2036_v24  ;;  %v718_v1 = vcombine.low %v714_v63, %v715_v0  ;;  %v1194_v4 = vld [vmem:[#allocation8] ss:$0 sm:$0xff] }
  0x9a   : > { %v1193_v29 = vld [vmem:[%s2161_s3] ss:$0 sm:$0xff] }
  0x9b   : > { %1442 = vmatpush3.bf16.msra.mxu0 %v2040_v27  ;;  %v725_v3 = vrot.slane %v718_v1, %v2109_v2  ;;  %v889_v31 = vld [vmem:[%s2164_s6] sm:$0x7] }
  0x9c   : > { %1478 = vmatpush3.bf16.msra.mxu1 %v2036_v24  ;;  %1444 = vmatprep.subr.bf16.mxu0 %v2048_v33 }
  0x9d   : > { %1480 = vmatprep.subr.bf16.mxu1 %v2044_v30  ;;  %s991_s13 = scalar_lea.vmem (%p2191_p12), %s2192_s17, %s1210_s14 }
  0x9f   : > { %1446 = vmatpush3.bf16.msra.mxu0 %v2048_v33 }
  0xa0   : > { %1482 = vmatpush3.bf16.msra.mxu1 %v2044_v30  ;;  %1448 = vmatprep.subr.bf16.mxu0 %v2056_v39 }
  0xa1   : > { %1484 = vmatprep.subr.bf16.mxu1 %v2052_v36 }
  0xa3   : > { %1450 = vmatpush3.bf16.msra.mxu0 %v2056_v39 }
  0xa4   : > { %1486 = vmatpush3.bf16.msra.mxu1 %v2052_v36  ;;  %1452 = vmatprep.subr.bf16.mxu0 %v2064_v45 }
  0xa5   : > { %1488 = vmatprep.subr.bf16.mxu1 %v2060_v42 }
  0xa7   : > { %1454 = vmatpush3.bf16.msra.mxu0 %v2064_v45 }
  0xa8   : > { %1490 = vmatpush3.bf16.msra.mxu1 %v2060_v42  ;;  %1456 = vmatprep.subr.bf16.mxu0 %v2072_v49 }
  0xa9   : > { %1492 = vmatprep.subr.bf16.mxu1 %v2068_v48 }
  0xab   : > { %1458 = vmatpush3.bf16.msra.mxu0 %v2072_v49 }
  0xac   : > { %1494 = vmatpush3.bf16.msra.mxu1 %v2068_v48  ;;  %1460 = vmatprep.subr.bf16.mxu0 %v2078_v52 }
  0xad   : > { %1519 = vmatprep.subr.bf16.mxu1 %v1788_v54 }
  0xaf   : > { %1356 = vmatmul.mubr.f32.vlgmr.msra.gmra.mrb[0].mxu1 %v497_v53  ;;  %1462 = vmatpush3.bf16.msra.mxu0 %v2078_v52 }
  0xb0   : > { %1521 = vmatpush3.bf16.msra.mxu1 %v2019_v7  ;;  %1358 = vmatprep.mubr.f32.mxu1 %v498_v55 }
  0xb1   : > { %1522 = vmatprep.subr.bf16.mxu1 %v1788_v54  ;;  %1495 = vmatprep.subr.bf16.mxu0 %v1788_v54 }
  0xb2   : > { %1318 = vmatmul.mubr.f32.vlgmr.msra.gmra.mrb[0].mxu0 %v497_v53  ;;  %v897_v53 = vrot.slane %v889_v31, %v896_v43 }
  0xb3   : > { %1359 = vmatmul.mubr.f32.gmra.mrb[2].mxu1 %v499_v56  ;;  %1497 = vmatpush3.bf16.msra.mxu0 %v2028_v17 }
  0xb4   : > { %1524 = vmatpush3.bf16.msra.mxu1 %v2021_v9  ;;  %1498 = vmatprep.subr.bf16.mxu0 %v1788_v54 }
  0xb5   : > { %1525 = vmatprep.subr.bf16.mxu1 %v1788_v54  ;;  %1428 = vmatprep.mubr.msk.f32.mxu1 %vm1789_vm0, %v1790_v57 }
  0xb6   : > { %1320 = vmatprep.mubr.f32.mxu0 %v498_v55 }
  0xb7   : > { %1321 = vmatmul.mubr.f32.gmra.mrb[2].mxu0 %v499_v56 }
  0xb8   : > { %1527 = vmatpush3.bf16.msra.mxu1 %v2026_v13  ;;  %1500 = vmatpush3.bf16.msra.mxu0 %v2031_v21 }
  0xb9   : > { %1528 = vmatprep.subr.bf16.mxu1 %v1788_v54  ;;  %1501 = vmatprep.subr.bf16.mxu0 %v1788_v54 }
  0xba   : > { %1393 = vmatprep.mubr.msk.f32.mxu0 %vm1789_vm0, %v1790_v57 }
  0xbc   : > { %1530 = vmatpush3.bf16.msra.mxu1 %v2036_v24  ;;  %1503 = vmatpush3.bf16.msra.mxu0 %v2040_v27 }
  0xbd   : > { %1531 = vmatprep.subr.bf16.mxu1 %v1788_v54  ;;  %1504 = vmatprep.subr.bf16.mxu0 %v1788_v54 }
  0xc0   : > { %1533 = vmatpush3.bf16.msra.mxu1 %v2044_v30  ;;  %1506 = vmatpush3.bf16.msra.mxu0 %v2048_v33  ;;  %v912_v30 = vsub.s32 1, %v2104_v62 }
  0xc1   : > { %1534 = vmatprep.subr.bf16.mxu1 %v1788_v54  ;;  %1507 = vmatprep.subr.bf16.mxu0 %v1788_v54 }
  0xc2   : > { %v913_v34 = vrot.slane %v889_v31, %v912_v30 }
  0xc4   : > { %1536 = vmatpush3.bf16.msra.mxu1 %v2052_v36  ;;  %1509 = vmatpush3.bf16.msra.mxu0 %v2056_v39 }
  0xc5   : > { %1537 = vmatprep.subr.bf16.mxu1 %v1788_v54  ;;  %1510 = vmatprep.subr.bf16.mxu0 %v1788_v54 }
  0xc8   : > { %1539 = vmatpush3.bf16.msra.mxu1 %v2060_v42  ;;  %1512 = vmatpush3.bf16.msra.mxu0 %v2064_v45 }
  0xc9   : > { %1540 = vmatprep.subr.bf16.mxu1 %v1788_v54  ;;  %1513 = vmatprep.subr.bf16.mxu0 %v1788_v54 }
  0xcc   : > { %1542 = vmatpush3.bf16.msra.mxu1 %v2068_v48  ;;  %1515 = vmatpush3.bf16.msra.mxu0 %v2072_v49 }
  0xcd   : > { %1516 = vmatprep.subr.bf16.mxu0 %v1788_v54 }
  0xcf   : > { %1429 = vmatmul.mubr.f32.vlgmr.msra.gmra.mrb[4].mxu1 %v725_v3 }
  0xd0   : > { %1518 = vmatpush3.bf16.msra.mxu0 %v2078_v52 }
  0xd3   : > { %1394 = vmatmul.mubr.f32.vlgmr.msra.gmra.mrb[4].mxu0 %v725_v3 }
 0x182   : > { %v1357_v5 = vpop.f32.mrb[0].mxu1 }
 0x183   : > { %v669_v6 = vadd.f32 %v1357_v5, %v1194_v4  ;;  %v663_v7 = vpop.f32.mrb[1].mxu1 }
 0x184   : > { %v664_v8 = vadd.f32 %v1194_v4, %v663_v7  ;;  %v928_v7 = vsub.s32 2, %v2104_v62 }
 0x185   : > { %v1196_v9 = vmul.f32 -1.442695, %v669_v6  ;;  %v1319_v12 = vpop.f32.mrb[0].mxu0 }
 0x186   : > { %v1195_v10 = vmul.f32 -1.442695, %v664_v8  ;;  %v1360_v11 = vpop.f32.mrb[2].mxu1  ;;  %v572_v15 = vpop.f32.mrb[1].mxu0  ;;  %v578_v32 = vadd.f32 %v1319_v12, %v1193_v29 }
 0x187   : > { %1614 = vpow2.f32 %v1196_v9  ;;  %v679_v13 = vadd.f32 %v1360_v11, %v1194_v4  ;;  %v673_v14 = vpop.f32.mrb[3].mxu1  ;;  %v573_v33 = vadd.f32 %v1193_v29, %v572_v15  ;;  %v929_v9 = vrot.slane %v889_v31, %v928_v7  ;;  %v1202_v15 = vld [vmem:[#allocation9] ss:$0 sm:$0xff] }
 0x188   : > { %1616 = vpow2.f32 %v1195_v10  ;;  %v674_v16 = vadd.f32 %v1194_v4, %v673_v14 }
 0x189   : > { %v1198_v17 = vmul.f32 -1.442695, %v679_v13 }
 0x18a   : > { %v1197_v18 = vmul.f32 -1.442695, %v674_v16  ;;  %v1322_v19 = vpop.f32.mrb[2].mxu0 }
 0x18b   : > { %1618 = vpow2.f32 %v1198_v17  ;;  %v582_v20 = vpop.f32.mrb[3].mxu0  ;;  %v588_v38 = vadd.f32 %v1322_v19, %v1193_v29 }
 0x18c   : > { %1620 = vpow2.f32 %v1197_v18  ;;  %v583_v40 = vadd.f32 %v1193_v29, %v582_v20 }
 0x191   : > { %v1615_v21 = vpop.eup %1614 }
 0x192   : > { %v1617_v22 = vpop.eup %1616  ;;  %v695_v23 = vadd.f32 1.0, %v1615_v21 }
 0x193   : > { %v694_v24 = vadd.f32 1.0, %v1617_v22 }
 0x194   : > { %1622 = vrcp.f32 %v695_v23 }
 0x195   : > { %v1619_v25 = vpop.eup %1618  ;;  %1624 = vrcp.f32 %v694_v24 }
 0x196   : > { %v1621_v26 = vpop.eup %1620  ;;  %v697_v27 = vadd.f32 1.0, %v1619_v25 }
 0x197   : > { %v696_v28 = vadd.f32 1.0, %v1621_v26 }
 0x198   : > { %1626 = vrcp.f32 %v697_v27 }
 0x199   : > { %1628 = vrcp.f32 %v696_v28 }
 0x19e   : > { %v1623_v35 = vpop.eup %1622 }
 0x19f   : > { %v1625_v36 = vpop.eup %1624  ;;  %v707_v37 = vmul.f32 %v1623_v35, %v578_v32 }
 0x1a0   : > { %v706_v39 = vmul.f32 %v1625_v36, %v573_v33 }
 0x1a1   : > { %711 = vst [vmem:[#allocation2 + $0x10] sm:$0xff] %v707_v37  ;;  %v915_v41 = vmul.f32 %v913_v34, %v707_v37 }
 0x1a2   : > { %v1627_v42 = vpop.eup %1626  ;;  %710 = vst [vmem:[#allocation2 + $0x8] sm:$0xff] %v706_v39  ;;  %v914_v44 = vmul.f32 %v913_v34, %v706_v39  ;;  %v863_v45 = vpop.f32.mrb[4].mxu1 }
 0x1a3   : > { %v1629_v46 = vpop.eup %1628  ;;  %v864_v47 = vadd.f32 %v1194_v4, %v863_v45  ;;  %v1430_v48 = vpop.f32.mrb[5].mxu1  ;;  %v709_v49 = vmul.f32 %v1627_v42, %v588_v38 }
 0x1a4   : > { %v708_v50 = vmul.f32 %v1629_v46, %v583_v40 }
 0x1a5   : > { %v1199_v51 = vmul.f32 -1.442695, %v864_v47  ;;  %713 = vst [vmem:[#allocation2 + $0x30] sm:$0xff] %v709_v49  ;;  %v917_v52 = vmul.f32 %v913_v34, %v709_v49 }
 0x1a6   : > { %712 = vst [vmem:[#allocation2 + $0x28] sm:$0xff] %v708_v50  ;;  %v916_v54 = vmul.f32 %v913_v34, %v708_v50  ;;  %v793_v55 = vpop.f32.mrb[4].mxu0 }
 0x1a7   : > { %1630 = vpow2.f32 %v1199_v51  ;;  %v1395_v56 = vpop.f32.mrb[5].mxu0  ;;  %v794_v3 = vadd.f32 %v1193_v29, %v793_v55 }
 0x1a9   : > { %v891_v57 = vld [vmem:[#allocation2 + $0xf] sm:$0xff] }
 0x1aa   : > { %v899_v58 = vmul.f32 %v897_v53, %v891_v57  ;;  %v922_v10 = vld [vmem:[#allocation2 + $0x9] sm:$0xff] }
 0x1ab   : > { %v930_v16 = vmul.f32 %v929_v9, %v922_v10 }
 0x1ac   : > { %v919_v59 = vadd.f32 %v915_v41, %v899_v58 }
 0x1ad   : > { %v893_v60 = vld [vmem:[#allocation2 + $0x2f] sm:$0xff] }
 0x1ae   : > { %v901_v61 = vmul.f32 %v897_v53, %v893_v60  ;;  %v924_v19 = vld [vmem:[#allocation2 + $0x29] sm:$0xff] }
 0x1af   : > { %v932_v24 = vmul.f32 %v929_v9, %v924_v19 }
 0x1b0   : > { %v921_v63 = vadd.f32 %v917_v52, %v901_v61 }
 0x1b1   : > { %v1631_v0 = vpop.eup %1630 }
 0x1b2   : > { %v870_v1 = vadd.f32 1.0, %v1631_v0 }
 0x1b4   : > { %1632 = vrcp.f32 %v870_v1 }
 0x1be   : > { %v1633_v4 = vpop.eup %1632 }
 0x1bf   : > { %v873_v5 = vmul.f32 %v1633_v4, %v794_v3 }
 0x1c1   : > { %v881_v6 = vrot.slane %v873_v5, %v2109_v2  ;;  %1200 = vst.sshfl [vmem:[#allocation2 + $0x7] sm:$0x1 pattern:$0x76325410] %v873_v5 }
 0x1c2   : > { %1201 = vst.sshfl [vmem:[#allocation2 + $0x17] sm:$0x2 pattern:$0x76325410] %v873_v5 }
 0x1c3   : > { %v882_v8 = vcombine.high %v881_v6, %v881_v6 }
 0x1c5   : > { %886 = vst [vmem:[#allocation2 + $0x27] sm:$0x1] %v882_v8  ;;  %888 = vst [vmem:[#allocation2 + $0x37] sm:$0x2] %v882_v8 }
 0x1c8   : > { %v890_v11 = vld [vmem:[#allocation2 + $0x7] sm:$0xff] }
 0x1c9   : > { %v923_v12 = vld [vmem:[#allocation2 + $0x11] sm:$0xff]  ;;  %v898_v13 = vmul.f32 %v897_v53, %v890_v11 }
 0x1ca   : > { %v931_v14 = vmul.f32 %v929_v9, %v923_v12 }
 0x1cb   : > { %v918_v17 = vadd.f32 %v914_v44, %v898_v13 }
 0x1cc   : > { %v935_v18 = vadd.f32 %v931_v14, %v919_v59  ;;  %v892_v2 = vld [vmem:[#allocation2 + $0x27] sm:$0xff]  ;;  %v925_v20 = vld [vmem:[#allocation2 + $0x31] sm:$0xff] }
 0x1cd   : > { %v900_v21 = vmul.f32 %v897_v53, %v892_v2  ;;  %v933_v22 = vmul.f32 %v929_v9, %v925_v20  ;;  %v934_v62 = vadd.f32 %v930_v16, %v918_v17 }
 0x1ce   : > { %v946_v23 = vadd.f32 %v1202_v15, %v935_v18 }
 0x1cf   : > { %v920_v25 = vadd.f32 %v916_v54, %v900_v21  ;;  %v937_v26 = vadd.f32 %v933_v22, %v921_v63  ;;  %v945_v27 = vadd.f32 %v1202_v15, %v934_v62 }
 0x1d0   : > { %950 = vst [vmem:[%s2128_s28 + $0x8] sm:$0xff] %v946_v23  ;;  %v963_v28 = vmul.f32 %v946_v23, %v946_v23 }
 0x1d1   : > { %v936_v29 = vadd.f32 %v932_v24, %v920_v25  ;;  %v948_v30 = vadd.f32 %v1202_v15, %v937_v26  ;;  %949 = vst [vmem:[%s2128_s28] sm:$0xff] %v945_v27  ;;  %v953_v31 = vadd.f32 %v946_v23, %v945_v27  ;;  %v962_v32 = vmul.f32 %v945_v27, %v945_v27 }
 0x1d3   : > { %v947_v33 = vadd.f32 %v1202_v15, %v936_v29  ;;  %952 = vst [vmem:[%s2128_s28 + $0x18] sm:$0xff] %v948_v30  ;;  %v966_v34 = vadd.f32 %v963_v28, %v962_v32  ;;  %v965_v38 = vmul.f32 %v948_v30, %v948_v30 }
 0x1d5   : > { %951 = vst [vmem:[%s2128_s28 + $0x10] sm:$0xff] %v947_v33  ;;  %v954_v35 = vadd.f32 %v953_v31, %v947_v33  ;;  %v964_v36 = vmul.f32 %v947_v33, %v947_v33 }
 0x1d7   : > { %v955_v37 = vadd.f32 %v954_v35, %v948_v30  ;;  %v967_v39 = vadd.f32 %v966_v34, %v964_v36  ;;  %v1027_v55 = vld [vmem:[%s2128_s28 + $0x8] sm:$0xff] (%p2191_p12) }
 0x1d8   : > { %v1025_v54 = vld [vmem:[%s2128_s28] sm:$0xff] (%p2191_p12)  ;;  %1028 = vst [vmem:[%s991_s13 + $0x8] sm:$0xff] (%p2191_p12), %v1027_v55 }
 0x1d9   : > { %v956_v40 = vrot.slane %v955_v37, 4  ;;  %v968_v41 = vadd.f32 %v967_v39, %v965_v38  ;;  %1026 = vst [vmem:[%s991_s13] sm:$0xff] (%p2191_p12), %v1025_v54 }
 0x1da   : > { %v1031_v57 = vld [vmem:[%s2128_s28 + $0x18] sm:$0xff] (%p2191_p12) }
 0x1db   : > { %v957_v42 = vadd.f32 %v956_v40, %v955_v37  ;;  %v969_v43 = vrot.slane %v968_v41, 4  ;;  %1032 = vst [vmem:[%s991_s13 + $0x28] sm:$0xff] (%p2191_p12), %v1031_v57 }
 0x1dc   : > { %v1029_v56 = vld [vmem:[%s2128_s28 + $0x10] sm:$0xff] (%p2191_p12) }
 0x1dd   : > { %v958_v44 = vrot.slane %v957_v42, 2  ;;  %v970_v45 = vadd.f32 %v969_v43, %v968_v41  ;;  %1030 = vst [vmem:[%s991_s13 + $0x20] sm:$0xff] (%p2191_p12), %v1029_v56 }
 0x1df   : > { %v959_v46 = vadd.f32 %v958_v44, %v957_v42  ;;  %v971_v47 = vrot.slane %v970_v45, 2 }
 0x1e1   : > { %v960_v48 = vrot.slane %v959_v46, 1  ;;  %v972_v49 = vadd.f32 %v971_v47, %v970_v45 }
 0x1e2   : > { %988 = sbr.rel (!%p2191_p12) target bundleno = 489 (0x1e9), region = 110 }
 0x1e3   : > { %v973_v50 = vrot.slane %v972_v49, 1  ;;  %v961_v51 = vadd.f32 %v960_v48, %v959_v46 }
 0x1e5   : > { %v974_v52 = vadd.f32 %v973_v50, %v972_v49 }
 0x1e7   : > { %v976_v53 = vsel %vm975_vm1, %v961_v51, %v974_v52 }
 0x1e8   : > { %977 = vst [vmem:[%s461_s16] sm:$0x3] %v976_v53 }
 0x1e9 PF: > { %s2193_s11 = sld [smem:[#allocation15_spill]]  ;;  %s2194_s19 = sld [smem:[#allocation16_spill]] }
 0x1ea   : > { %s2195_s30 = smov %s1776_s10 }
 0x1ef   : > { %p20_p0 = scmp.ge.s32.totalorder %s2193_s11, 4   ;;  %s2196_s10 = smov %s2194_s19 }
 0x1f1   :  { %22 = sbr.rel (!%p20_p0) target bundleno = 6 (0x6), region = 195 }
 0x1f8   :  { %1058 = vsyncpa [#allocation5], 1 }
 0x1f9   :  { %1060 = vsyncpa [#allocation5 + $0x1], 1 }
 0x1fa   :  { %1061 = vsyncpa [#allocation7], 1 }
 0x1fb   :  { %1062 = vsyncpa [#allocation10], 1 }

</bundles_post_ra>
